<compile_context>
chip_gen: v7x
topology: tpu7x:2x2x1
jax: 0.10.0
libtpu: 0.0.40
codegen_flags: <defaults>
</compile_context>

<pallas_src>
import math
from functools import partial

import jax
import jax.numpy as jnp
from jax.experimental import pallas as pl
from jax.experimental.pallas import tpu as pltpu


def _round_up(x, mult):
    return ((x + mult - 1) // mult) * mult


# ---------------------------------------------------------------------------
# Pallas kernel:  s * ( normalize(x) @ normalize(W)^T  -  m * one_hot(label) )
# ---------------------------------------------------------------------------
def _cosface_kernel(x_ref, w_ref, lbl_ref, o_ref, *, s, m, compute_dtype):
    # x_ref:   (TM, D)   raw input rows (VMEM-resident across the j axis)
    # w_ref:   (TN, D)   raw weight rows, native (N, D) layout
    # lbl_ref: (TM, 1)   int32 labels
    # o_ref:   (TM, TN)
    j = pl.program_id(1)
    tn = o_ref.shape[-1]

    # F.normalize: x / max(||x||, 1e-12)  ==  x * rsqrt(max(||x||^2, 1e-24)).
    x = x_ref[...].astype(jnp.float32)
    x_n = x * jax.lax.rsqrt(
        jnp.maximum(jnp.sum(x * x, axis=-1, keepdims=True), 1e-24))

    # Row-normalize this W tile in-kernel (replaces the wrapper's extra HBM
    # passes over W).  Zero-padded rows stay exactly zero.
    w = w_ref[...].astype(jnp.float32)
    w_n = w * jax.lax.rsqrt(
        jnp.maximum(jnp.sum(w * w, axis=-1, keepdims=True), 1e-24))

    # (TM, D) x (TN, D) -> (TM, TN), contracting D on both operands.
    # bf16 operands, f32 accumulation on the MXU.
    cos = jax.lax.dot_general(
        x_n.astype(compute_dtype), w_n.astype(compute_dtype),
        dimension_numbers=(((1,), (1,)), ((), ())),
        preferred_element_type=jnp.float32)

    # one-hot margin via local iota == (label - j*tn); replaces torch scatter_.
    local_lbl = lbl_ref[...] - j * tn                        # (TM, 1)
    col = jax.lax.broadcasted_iota(jnp.int32, cos.shape, 1)  # (TM, TN)
    s_cos = cos * s
    o_ref[...] = jnp.where(col == local_lbl, s_cos - (s * m),
                           s_cos).astype(o_ref.dtype)


# ---------------------------------------------------------------------------
# Wrapper: tile selection, padding, pallas_call
# ---------------------------------------------------------------------------
def cosface_forward(x, weight, label, *, s=30.0, m=0.3,
                    block_m=1024, block_n=1024,
                    compute_dtype=jnp.bfloat16,
                    vmem_budget_bytes=40 * 1024 * 1024):
    """x: (M, D) f32, weight: (N, D) f32, label: (M,) int -> (M, N) f32."""
    M, D = x.shape
    N, D_w = weight.shape
    assert D == D_w, (D, D_w)

    x_p = x.astype(jnp.float32)
    w_p = weight.astype(jnp.float32)

    # --- tile selection ------------------------------------------------------
    # tm: whole (padded) batch in one tile when possible => grid_i == 1 and the
    #     dominant HBM stream (W) is read exactly once.
    # tn: large lane-dense (multiple of 128) class tile.  Shrink tn first, then
    #     tm, to fit a VMEM budget that is safe for v7x's 64 MiB physical VMEM.
    tm = min(_round_up(block_m, 8), _round_up(M, 8))
    tn = min(_round_up(block_n, 128), _round_up(N, 128))

    def est_vmem(bm, bn):
        # double-buffered x, W, labels, out (all f32 in VMEM)
        return 2 * 4 * (bm * D + bn * D + bm + bm * bn)

    while tn > 128 and est_vmem(tm, tn) > vmem_budget_bytes:
        tn = max(128, (tn // 2 // 128) * 128)
    while tm > 8 and est_vmem(tm, tn) > vmem_budget_bytes:
        tm = max(8, (tm // 2 // 8) * 8)

    m_pad = _round_up(M, tm)
    n_pad = _round_up(N, tn)
    grid = (m_pad // tm, n_pad // tn)

    # --- padding (rows only; no transpose, no wrapper-side W normalization) --
    if m_pad != M:
        x_p = jnp.pad(x_p, ((0, m_pad - M), (0, 0)))
    if n_pad != N:
        w_p = jnp.pad(w_p, ((0, n_pad - N), (0, 0)))

    lbl = label.astype(jnp.int32).reshape(M, 1)
    if m_pad != M:
        # Padded rows get label -1 -> never matches a column -> no margin.
        lbl = jnp.pad(lbl, ((0, m_pad - M), (0, 0)), constant_values=-1)

    # Actual traffic: x read once, W re-streamed once per i block, out once.
    cost = pl.CostEstimate(
        flops=2 * m_pad * D * n_pad,
        transcendentals=grid[1] * m_pad + grid[0] * n_pad,   # rsqrt calls
        bytes_accessed=4 * (m_pad * D + grid[0] * n_pad * D
                            + m_pad * n_pad + m_pad),
    )

    vmem_limit = int(min(60 * 1024 * 1024,
                         max(est_vmem(tm, tn) + 16 * 1024 * 1024,
                             32 * 1024 * 1024)))

    out = pl.pallas_call(
        partial(_cosface_kernel, s=float(s), m=float(m),
                compute_dtype=compute_dtype),
        out_shape=jax.ShapeDtypeStruct((m_pad, n_pad), jnp.float32),
        grid_spec=pltpu.PrefetchScalarGridSpec(
            num_scalar_prefetch=0,
            grid=grid,
            in_specs=[
                pl.BlockSpec((tm, D), lambda i, j: (i, 0)),   # x rows (resident over j)
                pl.BlockSpec((tn, D), lambda i, j: (j, 0)),   # raw W rows (native layout)
                pl.BlockSpec((tm, 1), lambda i, j: (i, 0)),   # labels
            ],
            out_specs=pl.BlockSpec((tm, tn), lambda i, j: (i, j)),
        ),
        compiler_params=pltpu.CompilerParams(
            dimension_semantics=("parallel", "parallel"),
            vmem_limit_bytes=vmem_limit,
        ),
        cost_estimate=cost,
    )(x_p, w_p, lbl)

    return out[:M, :N]


# ---------------------------------------------------------------------------
# Module mirroring the PyTorch Cosface
# ---------------------------------------------------------------------------
class Cosface:
    def __init__(self, in_features, out_features, s=30.0, m=0.3,
                 compute_dtype=jnp.bfloat16, key=jax.random.PRNGKey(0)):
        self.in_features = in_features
        self.out_features = out_features
        self.s = s
        self.m = m
        self.compute_dtype = compute_dtype
        # xavier_uniform_ on (out_features, in_features)
        bound = math.sqrt(6.0 / (in_features + out_features))
        self.weight = jax.random.uniform(
            key, (out_features, in_features),
            minval=-bound, maxval=bound, dtype=jnp.float32)

    def __call__(self, x, label):
        return cosface_forward(x, self.weight, label, s=self.s, m=self.m,
                               compute_dtype=self.compute_dtype)


# ---------------------------------------------------------------------------
# Pure-JAX reference for correctness checking
# ---------------------------------------------------------------------------
def _reference(weight, x, label, s, m):
    x = x.astype(jnp.float32)
    w = weight.astype(jnp.float32)
    x_n = x / jnp.maximum(
        jnp.sqrt(jnp.sum(x * x, axis=-1, keepdims=True)), 1e-12)
    w_n = w / jnp.maximum(
        jnp.sqrt(jnp.sum(w * w, axis=-1, keepdims=True)), 1e-12)
    cos = jnp.dot(x_n, w_n.T, precision=jax.lax.Precision.HIGHEST)
    onehot = jax.nn.one_hot(label, w.shape[0], dtype=jnp.float32)
    return s * (onehot * (cos - m) + (1.0 - onehot) * cos)


if __name__ == "__main__":
    key = jax.random.PRNGKey(0)
    k_x, k_l, k_w = jax.random.split(key, 3)

    B, D, N = 8, 32, 200   # batch, in_features (hidden), out_features (classes)
    module = Cosface(D, N, s=30.0, m=0.3, key=k_w)

    x = jax.random.normal(k_x, (B, D), dtype=jnp.float32)
    label = jax.random.randint(k_l, (B,), 0, N, dtype=jnp.int32)

    ref = _reference(module.weight, x, label, module.s, module.m)

    # Default fast path: bf16 MXU operands, f32 normalization + accumulation.
    out = jax.block_until_ready(module(x, label))
    assert out.shape == (B, N), out.shape
    # Worst-case |err| <= s * 2^-8 (bf16 rounding of a unit-norm dot) ~ 0.12.
    err_bf16 = float(jnp.max(jnp.abs(out - ref)))
    assert err_bf16 < 0.15, err_bf16

    # Exact path: f32 MXU operands; block_n=128 forces 2 class tiles, which
    # exercises the per-tile label offset and padded-column slicing.
    out_f32 = jax.block_until_ready(
        cosface_forward(x, module.weight, label, s=module.s, m=module.m,
                        compute_dtype=jnp.float32, block_n=128))
    err_f32 = float(jnp.max(jnp.abs(out_f32 - ref)))
    assert err_f32 < 1e-3, err_f32

    print("KERNEL_OK")
</pallas_src>

<mosaic_0001>
module attributes {stable_mosaic.version = 11 : i64} {
  func.func @_cosface_kernel(%arg0: i32, %arg1: i32, %arg2: memref<8x32xf32, #tpu.memory_space<vmem>>, %arg3: memref<256x32xf32, #tpu.memory_space<vmem>>, %arg4: memref<8x1xi32, #tpu.memory_space<vmem>>, %arg5: memref<8x256xf32, #tpu.memory_space<vmem>>) attributes {dimension_semantics = [#tpu.dimension_semantics<parallel>, #tpu.dimension_semantics<parallel>], iteration_bounds = array<i64: 1, 1>, scalar_prefetch = 0 : i64, scratch_operands = 0 : i64, tpu.core_type = #tpu.core_type<tc>, window_params = [{transform_indices = @transform_0, window_bounds = array<i64: 8, 32>}, {transform_indices = @transform_1, window_bounds = array<i64: 256, 32>}, {transform_indices = @transform_2, window_bounds = array<i64: 8, 1>}, {transform_indices = @transform_3, window_bounds = array<i64: 8, 256>}]} {
    %c0 = arith.constant 0 : index
    %c0_0 = arith.constant 0 : index
    %0 = vector.load %arg2[%c0, %c0_0] : memref<8x32xf32, #tpu.memory_space<vmem>>, vector<8x32xf32>
    %1 = arith.mulf %0, %0 : vector<8x32xf32>
    %cst = arith.constant dense<0.000000e+00> : vector<8xf32>
    %2 = vector.multi_reduction <add>, %1, %cst [1] : vector<8x32xf32> to vector<8xf32>
    %3 = vector.shape_cast %2 : vector<8xf32> to vector<8x1xf32>
    %cst_1 = arith.constant 1.000000e-24 : f32
    %4 = vector.broadcast %cst_1 : f32 to vector<8x1xf32>
    %5 = arith.maximumf %3, %4 : vector<8x1xf32>
    %6 = math.rsqrt %5 : vector<8x1xf32>
    %7 = vector.broadcast %6 : vector<8x1xf32> to vector<8x32xf32>
    %8 = arith.mulf %0, %7 : vector<8x32xf32>
    %c0_2 = arith.constant 0 : index
    %c0_3 = arith.constant 0 : index
    %9 = vector.load %arg3[%c0_2, %c0_3] : memref<256x32xf32, #tpu.memory_space<vmem>>, vector<256x32xf32>
    %10 = arith.mulf %9, %9 : vector<256x32xf32>
    %cst_4 = arith.constant dense<0.000000e+00> : vector<256xf32>
    %11 = vector.multi_reduction <add>, %10, %cst_4 [1] : vector<256x32xf32> to vector<256xf32>
    %12 = vector.shape_cast %11 : vector<256xf32> to vector<256x1xf32>
    %cst_5 = arith.constant 1.000000e-24 : f32
    %13 = vector.broadcast %cst_5 : f32 to vector<256x1xf32>
    %14 = arith.maximumf %12, %13 : vector<256x1xf32>
    %15 = math.rsqrt %14 : vector<256x1xf32>
    %16 = vector.broadcast %15 : vector<256x1xf32> to vector<256x32xf32>
    %17 = arith.mulf %9, %16 : vector<256x32xf32>
    %18 = arith.truncf %8 : vector<8x32xf32> to vector<8x32xbf16>
    %19 = arith.truncf %17 : vector<256x32xf32> to vector<256x32xbf16>
    %cst_6 = arith.constant dense<0.000000e+00> : vector<8x256xf32>
    %20 = tpu.matmul %18, %19, %cst_6 {dimension_numbers = #tpu.dot_dimension_numbers<[1], [1], [0], [0], [0, 0, 1, 0], [], []>} : vector<8x32xbf16>, vector<256x32xbf16>, vector<8x256xf32> -> vector<8x256xf32>
    %c0_7 = arith.constant 0 : index
    %c0_8 = arith.constant 0 : index
    %21 = vector.load %arg4[%c0_7, %c0_8] : memref<8x1xi32, #tpu.memory_space<vmem>>, vector<8x1xi32>
    %c256_i32 = arith.constant 256 : i32
    %22 = arith.muli %arg1, %c256_i32 : i32
    %23 = vector.broadcast %22 : i32 to vector<8x1xi32>
    %24 = arith.subi %21, %23 : vector<8x1xi32>
    %25 = tpu.iota {dimensions = array<i32: 1>} : vector<8x256xi32>
    %cst_9 = arith.constant 3.000000e+01 : f32
    %26 = vector.broadcast %cst_9 : f32 to vector<8x256xf32>
    %27 = arith.mulf %20, %26 : vector<8x256xf32>
    %28 = vector.broadcast %24 : vector<8x1xi32> to vector<8x256xi32>
    %29 = arith.cmpi eq, %25, %28 : vector<8x256xi32>
    %cst_10 = arith.constant 9.000000e+00 : f32
    %30 = vector.broadcast %cst_10 : f32 to vector<8x256xf32>
    %31 = arith.subf %27, %30 : vector<8x256xf32>
    %32 = arith.select %29, %31, %27 : vector<8x256xi1>, vector<8x256xf32>
    %c0_11 = arith.constant 0 : index
    %c0_12 = arith.constant 0 : index
    %33 = vector.load %arg5[%c0_11, %c0_12] : memref<8x256xf32, #tpu.memory_space<vmem>>, vector<8x256xf32>
    tpu.vector_store %arg5[%c0_11, %c0_12], %32 {strides = array<i32>} : memref<8x256xf32, #tpu.memory_space<vmem>>, vector<8x256xf32>,
    return
  }
  func.func @transform_0(%arg0: i32, %arg1: i32) -> (i32, i32) {
    %c0_i32 = arith.constant 0 : i32
    %c0_i32_0 = arith.constant 0 : i32
    return %arg0, %c0_i32 : i32, i32
  }
  func.func @transform_1(%arg0: i32, %arg1: i32) -> (i32, i32) {
    %c0_i32 = arith.constant 0 : i32
    %c0_i32_0 = arith.constant 0 : i32
    return %arg1, %c0_i32 : i32, i32
  }
  func.func @transform_2(%arg0: i32, %arg1: i32) -> (i32, i32) {
    %c0_i32 = arith.constant 0 : i32
    %c0_i32_0 = arith.constant 0 : i32
    return %arg0, %c0_i32 : i32, i32
  }
  func.func @transform_3(%arg0: i32, %arg1: i32) -> (i32, i32) {
    %c0_i32 = arith.constant 0 : i32
    return %arg0, %arg1 : i32, i32
  }
}

</mosaic_0001>

<bundles_post_ra>
// kernel: tpu_custom_call.1
= control target key start
LH: loop header
LB: loop body
LE: loop exit
PB: predicated region body
PF: predicated region fallthrough
CT: control target
= control target key end

     0   :  { %vm18_vm0 = vcmask 261120   ;;  %s899_s0 = inlined_call_operand.vmem [shape: f32[8,32], index: 0, kind: input, shape index: {}]   ;;  %s900_s1 = inlined_call_operand.vmem [shape: f32[256,32], index: 1, kind: input, shape index: {}]   ;;  %s901_s2 = inlined_call_operand.vmem [shape: s32[8,1], index: 2, kind: input, shape index: {}]   ;;  %s902_s3 = inlined_call_operand.hbm [shape: f32[8,256], index: 3, kind: output, shape index: {}]  }
   0x1   :  { %v572_v0 = vld [vmem:[%s900_s1 + $0x80] sm:$0xff]  ;;  %v582_v2 = vld [vmem:[%s900_s1 + $0x88] sm:$0xff]  ;;  %v600_v8 = vld [vmem:[%s900_s1 + $0x18] sm:$0xff] }
   0x2   :  { %v577_v1 = vld [vmem:[%s900_s1] sm:$0xff]  ;;  %v73_v3 = vmul.f32 %v572_v0, %v572_v0  ;;  %v74_v5 = vmul.f32 %v582_v2, %v582_v2  ;;  %v593_v6 = vld [vmem:[%s900_s1 + $0x8] sm:$0xff]  ;;  %v605_v9 = vld [vmem:[%s900_s1 + $0x10] sm:$0xff]  ;;  %v60_v14 = vmul.f32 %v600_v8, %v600_v8 }
   0x3   :  { %v57_v4 = vmul.f32 %v577_v1, %v577_v1  ;;  %v58_v7 = vmul.f32 %v593_v6, %v593_v6  ;;  %v59_v15 = vmul.f32 %v605_v9, %v605_v9  ;;  %v618_v16 = vld [vmem:[%s900_s1 + $0x98] sm:$0xff]  ;;  %v623_v17 = vld [vmem:[%s900_s1 + $0x90] sm:$0xff]  ;;  %v634_v22 = vld [vmem:[%s900_s1 + $0x28] sm:$0xff] }
   0x4   :  { %v137_v10 = vsel %vm18_vm0, %v73_v3, 0.0  ;;  %v140_v12 = vsel %vm18_vm0, %v74_v5, 0.0  ;;  %v98_v18 = vsel %vm18_vm0, %v60_v14, 0.0  ;;  %v76_v20 = vmul.f32 %v618_v16, %v618_v16  ;;  %v639_v23 = vld [vmem:[%s900_s1 + $0x20] sm:$0xff] }
   0x5   :  { %v89_v11 = vsel %vm18_vm0, %v57_v4, 0.0  ;;  %138 = vadd.xlane.f32.xlu1 %v137_v10  ;;  %v92_v13 = vsel %vm18_vm0, %v58_v7, 0.0  ;;  %v95_v19 = vsel %vm18_vm0, %v59_v15, 0.0  ;;  %v75_v21 = vmul.f32 %v623_v17, %v623_v17 }
   0x6   :  { %90 = vadd.xlane.f32.xlu0 %v89_v11 }
   0x9   :  { %141 = vadd.xlane.f32.xlu1 %v140_v12 }
   0xa   :  { %93 = vadd.xlane.f32.xlu0 %v92_v13 }
   0xb   :  { %8 = vsyncpa [#allocation3], 0  ;;  %v146_v24 = vsel %vm18_vm0, %v76_v20, 0.0  ;;  %v143_v25 = vsel %vm18_vm0, %v75_v21, 0.0  ;;  %v62_v26 = vmul.f32 %v634_v22, %v634_v22  ;;  %v61_v27 = vmul.f32 %v639_v23, %v639_v23  ;;  %v650_v28 = vld [vmem:[%s900_s1 + $0xa8] sm:$0xff]  ;;  %v655_v29 = vld [vmem:[%s900_s1 + $0xa0] sm:$0xff] }
   0xc   :  { %v78_v32 = vmul.f32 %v650_v28, %v650_v28  ;;  %v77_v33 = vmul.f32 %v655_v29, %v655_v29  ;;  %v666_v34 = vld [vmem:[%s900_s1 + $0x38] sm:$0xff]  ;;  %v671_v35 = vld [vmem:[%s900_s1 + $0x30] sm:$0xff]  ;;  %v698_v46 = vld [vmem:[%s900_s1 + $0x48] sm:$0xff] }
   0xd   :  { %99 = vadd.xlane.f32.xlu1 %v98_v18  ;;  %v104_v30 = vsel %vm18_vm0, %v62_v26, 0.0  ;;  %v101_v31 = vsel %vm18_vm0, %v61_v27, 0.0  ;;  %v64_v38 = vmul.f32 %v666_v34, %v666_v34  ;;  %v63_v39 = vmul.f32 %v671_v35, %v671_v35  ;;  %v682_v40 = vld [vmem:[%s900_s1 + $0xb8] sm:$0xff]  ;;  %v687_v41 = vld [vmem:[%s900_s1 + $0xb0] sm:$0xff]  ;;  %v703_v47 = vld [vmem:[%s900_s1 + $0x40] sm:$0xff] }
   0xe   :  { %96 = vadd.xlane.f32.xlu0 %v95_v19  ;;  %v152_v36 = vsel %vm18_vm0, %v78_v32, 0.0  ;;  %v149_v37 = vsel %vm18_vm0, %v77_v33, 0.0  ;;  %v80_v44 = vmul.f32 %v682_v40, %v682_v40  ;;  %v79_v45 = vmul.f32 %v687_v41, %v687_v41  ;;  %v714_v52 = vld [vmem:[%s900_s1 + $0xc8] sm:$0xff]  ;;  %v719_v53 = vld [vmem:[%s900_s1 + $0xc0] sm:$0xff]  ;;  %v730_v58 = vld [vmem:[%s900_s1 + $0x58] sm:$0xff] }
   0xf   :  { %v110_v42 = vsel %vm18_vm0, %v64_v38, 0.0  ;;  %v107_v43 = vsel %vm18_vm0, %v63_v39, 0.0  ;;  %v66_v50 = vmul.f32 %v698_v46, %v698_v46  ;;  %v65_v51 = vmul.f32 %v703_v47, %v703_v47  ;;  %v735_v59 = vld [vmem:[%s900_s1 + $0x50] sm:$0xff]  ;;  %v746_v3 = vld [vmem:[%s900_s1 + $0xd8] sm:$0xff]  ;;  %v762_v12 = vld [vmem:[%s900_s1 + $0x68] sm:$0xff] }
  0x10   :  { %v158_v48 = vsel %vm18_vm0, %v80_v44, 0.0  ;;  %v155_v49 = vsel %vm18_vm0, %v79_v45, 0.0  ;;  %v82_v56 = vmul.f32 %v714_v52, %v714_v52  ;;  %v81_v57 = vmul.f32 %v719_v53, %v719_v53  ;;  %v751_v4 = vld [vmem:[%s900_s1 + $0xd0] sm:$0xff]  ;;  %v767_v13 = vld [vmem:[%s900_s1 + $0x60] sm:$0xff]  ;;  %v778_v20 = vld [vmem:[%s900_s1 + $0xe8] sm:$0xff] }
  0x11   :  { %147 = vadd.xlane.f32.xlu1 %v146_v24  ;;  %v116_v54 = vsel %vm18_vm0, %v66_v50, 0.0  ;;  %v113_v55 = vsel %vm18_vm0, %v65_v51, 0.0  ;;  %v68_v62 = vmul.f32 %v730_v58, %v730_v58  ;;  %v67_v63 = vmul.f32 %v735_v59, %v735_v59  ;;  %v783_v21 = vld [vmem:[%s900_s1 + $0xe0] sm:$0xff]  ;;  %v810_v38 = vld [vmem:[%s900_s1 + $0xf8] sm:$0xff]  ;;  %v815_v39 = vld [vmem:[%s900_s1 + $0xf0] sm:$0xff] }
  0x12   :  { %144 = vadd.xlane.f32.xlu0 %v143_v25  ;;  %v164_v60 = vsel %vm18_vm0, %v82_v56, 0.0  ;;  %v161_v61 = vsel %vm18_vm0, %v81_v57, 0.0  ;;  %v84_v10 = vmul.f32 %v746_v3, %v746_v3  ;;  %v83_v11 = vmul.f32 %v751_v4, %v751_v4 }
  0x13   :  { %v122_v5 = vsel %vm18_vm0, %v68_v62, 0.0  ;;  %v119_v7 = vsel %vm18_vm0, %v67_v63, 0.0  ;;  %v70_v18 = vmul.f32 %v762_v12, %v762_v12  ;;  %v69_v19 = vmul.f32 %v767_v13, %v767_v13 }
  0x14   :  { %v170_v14 = vsel %vm18_vm0, %v84_v10, 0.0  ;;  %v167_v15 = vsel %vm18_vm0, %v83_v11, 0.0  ;;  %v86_v26 = vmul.f32 %v778_v20, %v778_v20  ;;  %v85_v27 = vmul.f32 %v783_v21, %v783_v21 }
  0x15   :  { %105 = vadd.xlane.f32.xlu1 %v104_v30  ;;  %v128_v24 = vsel %vm18_vm0, %v70_v18, 0.0  ;;  %v125_v25 = vsel %vm18_vm0, %v69_v19, 0.0  ;;  %v794_v30 = vld [vmem:[%s900_s1 + $0x78] sm:$0xff]  ;;  %v88_v44 = vmul.f32 %v810_v38, %v810_v38  ;;  %v87_v45 = vmul.f32 %v815_v39, %v815_v39 }
  0x16   :  { %102 = vadd.xlane.f32.xlu0 %v101_v31  ;;  %v799_v31 = vld [vmem:[%s900_s1 + $0x70] sm:$0xff]  ;;  %v176_v32 = vsel %vm18_vm0, %v86_v26, 0.0  ;;  %v173_v33 = vsel %vm18_vm0, %v85_v27, 0.0  ;;  %v547_v56 = vmov 0  }
  0x17   :  { %v179_v50 = vsel %vm18_vm0, %v87_v45, 0.0  ;;  %455 = vset.pattern.permute.xlu1 %v547_v56  ;;  %456 = vset.pattern.permute.xlu0 %v547_v56 }
  0x19   :  { %153 = vadd.xlane.f32.xlu1 %v152_v36  ;;  %v72_v36 = vmul.f32 %v794_v30, %v794_v30 }
  0x1a   :  { %150 = vadd.xlane.f32.xlu0 %v149_v37  ;;  %v71_v37 = vmul.f32 %v799_v31, %v799_v31 }
  0x1d   :  { %111 = vadd.xlane.f32.xlu1 %v110_v42  ;;  %v134_v42 = vsel %vm18_vm0, %v72_v36, 0.0 }
  0x1e   :  { %108 = vadd.xlane.f32.xlu0 %v107_v43  ;;  %v131_v43 = vsel %vm18_vm0, %v71_v37, 0.0 }
  0x21   :  { %159 = vadd.xlane.f32.xlu1 %v158_v48  ;;  %v826_v48 = vld [vmem:[%s899_s0] sm:$0xff]  ;;  %s548_s0 = smov [#allocation2]  }
  0x22   :  { %156 = vadd.xlane.f32.xlu0 %v155_v49  ;;  %v182_v49 = vsel %vm18_vm0, %v88_v44, 0.0  ;;  %v17_v51 = vmul.f32 %v826_v48, %v826_v48 }
  0x25   :  { %117 = vadd.xlane.f32.xlu1 %v116_v54  ;;  %v19_v54 = vsel %vm18_vm0, %v17_v51, 0.0 }
  0x26   :  { %114 = vadd.xlane.f32.xlu0 %v113_v55  ;;  %v390_v55 = vld [vmem:[%s901_s2] sm:$0xff]  ;;  %s416_s2 = sshll.u32 %s548_s0, 4  ;;  %s417_s2 = int_to_ptr.vmem [resolvable:$true] %s416_s2 }
  0x27   :  { %s523_s25 = scalar_lea.vmem %s417_s2, 256  ;;  %p528_p1 = scmp.lt.s32.totalorder %s417_s2, %s417_s2 }
  0x28   :  { %p524_p0 = scmp.ne.s32.totalorder %s417_s2, %s523_s25  ;;  %p529_p2 = scmp.lt.s32.totalorder %s523_s25, %s523_s25 }
  0x29   :  { %165 = vadd.xlane.f32.xlu1 %v164_v60 }
  0x2a   :  { %162 = vadd.xlane.f32.xlu0 %v161_v61  ;;  %p530_p3 = por %p529_p2, %p528_p1 }
  0x2c   :  { %p531_p4 = pnand %p530_p3, %p524_p0 }
  0x2d   :  { %123 = vadd.xlane.f32.xlu1 %v122_v5 }
  0x2e   :  { %120 = vadd.xlane.f32.xlu0 %v119_v7 }
  0x31   :  { %171 = vadd.xlane.f32.xlu1 %v170_v14 }
  0x32   :  { %168 = vadd.xlane.f32.xlu0 %v167_v15 }
  0x35   :  { %129 = vadd.xlane.f32.xlu1 %v128_v24 }
  0x36   :  { %126 = vadd.xlane.f32.xlu0 %v125_v25 }
  0x39   :  { %177 = vadd.xlane.f32.xlu1 %v176_v32 }
  0x3a   :  { %174 = vadd.xlane.f32.xlu0 %v173_v33 }
  0x3d   :  { %135 = vadd.xlane.f32.xlu1 %v134_v42 }
  0x3e   :  { %132 = vadd.xlane.f32.xlu0 %v131_v43 }
  0x41   :  { %183 = vadd.xlane.f32.xlu1 %v182_v49 }
  0x42   :  { %180 = vadd.xlane.f32.xlu0 %v179_v50 }
  0x46   :  { %20 = vadd.xlane.f32.xlu0 %v19_v54 }
  0x52   :  { %400 = vperm.xlu1 %455, %v390_v55  }
  0x92   :  { %v139_v57 = vpop.xlane.xlu1 %138 }
  0x93   :  { %v91_v60 = vpop.xlane.xlu0 %90  ;;  %v201_v61 = vmax.f32 %v139_v57, 1e-24 }
  0x94   :  { %v185_v62 = vmax.f32 %v91_v60, 1e-24 }
  0x95   :  { %457 = vrsqrt.f32 %v201_v61 }
  0x96   :  { %v142_v63 = vpop.xlane.xlu1 %141  ;;  %459 = vrsqrt.f32 %v185_v62 }
  0x97   :  { %v94_v5 = vpop.xlane.xlu0 %93  ;;  %v202_v7 = vmax.f32 %v142_v63, 1e-24 }
  0x98   :  { %v186_v10 = vmax.f32 %v94_v5, 1e-24 }
  0x99   :  { %461 = vrsqrt.f32 %v202_v7 }
  0x9a   :  { %463 = vrsqrt.f32 %v186_v10  ;;  %v100_v11 = vpop.xlane.xlu1 %99 }
  0x9b   :  { %v97_v14 = vpop.xlane.xlu0 %96  ;;  %v188_v15 = vmax.f32 %v100_v11, 1e-24 }
  0x9c   :  { %v187_v18 = vmax.f32 %v97_v14, 1e-24 }
  0x9d   :  { %465 = vrsqrt.f32 %v188_v15 }
  0x9e   :  { %467 = vrsqrt.f32 %v187_v18  ;;  %v148_v19 = vpop.xlane.xlu1 %147 }
  0x9f   :  { %v145_v24 = vpop.xlane.xlu0 %144  ;;  %v204_v25 = vmax.f32 %v148_v19, 1e-24  ;;  %v458_v27 = vpop.eup %457 }
  0xa0   :  { %v203_v26 = vmax.f32 %v145_v24, 1e-24  ;;  %v460_v32 = vpop.eup %459  ;;  %v265_v45 = vmul.f32 %v458_v27, %v572_v0 }
  0xa1   :  { %469 = vrsqrt.f32 %v204_v25  ;;  %v249_v50 = vmul.f32 %v460_v32, %v577_v1 }
  0xa2   :  { %471 = vrsqrt.f32 %v203_v26  ;;  %v106_v33 = vpop.xlane.xlu1 %105 }
  0xa3   :  { %v103_v36 = vpop.xlane.xlu0 %102  ;;  %v462_v37 = vpop.eup %461  ;;  %v190_v42 = vmax.f32 %v106_v33, 1e-24 }
  0xa4   :  { %v189_v43 = vmax.f32 %v103_v36, 1e-24  ;;  %v464_v44 = vpop.eup %463  ;;  %v266_v49 = vmul.f32 %v462_v37, %v582_v2 }
  0xa5   :  { %473 = vrsqrt.f32 %v190_v42  ;;  %v250_v51 = vmul.f32 %v464_v44, %v593_v6 }
  0xa6   :  { %475 = vrsqrt.f32 %v189_v43  ;;  %v154_v54 = vpop.xlane.xlu1 %153  ;;  %v290_v56 = vpack.c.bf16 %v266_v49, %v265_v45 }
  0xa7   :  { %v151_v55 = vpop.xlane.xlu0 %150  ;;  %v466_v57 = vpop.eup %465  ;;  %v206_v60 = vmax.f32 %v154_v54, 1e-24  ;;  %v282_v62 = vpack.c.bf16 %v250_v51, %v249_v50 }
  0xa8   :  { %v205_v61 = vmax.f32 %v151_v55, 1e-24  ;;  %v468_v63 = vpop.eup %467  ;;  %445 = vmatprep.subr.msk.bf16.mxu0 %vm18_vm0, %v290_v56  ;;  %v252_v1 = vmul.f32 %v466_v57, %v600_v8 }
  0xa9   :  { %477 = vrsqrt.f32 %v206_v60  ;;  %v302_v0 = vsel %vm18_vm0, %v282_v62, 0  ;;  %v251_v2 = vmul.f32 %v468_v63, %v605_v9 }
  0xaa   :  { %479 = vrsqrt.f32 %v205_v61  ;;  %428 = vmatpush3.bf16.xpose.msra.mxu0 %v302_v0  ;;  %v112_v6 = vpop.xlane.xlu1 %111 }
  0xab   :  { %v109_v5 = vpop.xlane.xlu0 %108  ;;  %v470_v7 = vpop.eup %469  ;;  %v192_v10 = vmax.f32 %v112_v6, 1e-24  ;;  %v283_v19 = vpack.c.bf16 %v252_v1, %v251_v2 }
  0xac   :  { %v191_v11 = vmax.f32 %v109_v5, 1e-24  ;;  %v472_v14 = vpop.eup %471  ;;  %v268_v15 = vmul.f32 %v470_v7, %v618_v16 }
  0xad   :  { %481 = vrsqrt.f32 %v192_v10  ;;  %v267_v18 = vmul.f32 %v472_v14, %v623_v17  ;;  %v305_v33 = vsel %vm18_vm0, %v283_v19, 0 }
  0xae   :  { %483 = vrsqrt.f32 %v191_v11  ;;  %v160_v24 = vpop.xlane.xlu1 %159 }
  0xaf   :  { %v157_v25 = vpop.xlane.xlu0 %156  ;;  %v474_v9 = vpop.eup %473  ;;  %v208_v26 = vmax.f32 %v160_v24, 1e-24  ;;  %v291_v27 = vpack.c.bf16 %v268_v15, %v267_v18 }
  0xb0   :  { %v207_v8 = vmax.f32 %v157_v25, 1e-24  ;;  %v476_v32 = vpop.eup %475  ;;  %v254_v16 = vmul.f32 %v474_v9, %v634_v22 }
  0xb1   :  { %485 = vrsqrt.f32 %v208_v26  ;;  %446 = vmatprep.subr.msk.bf16.mxu0 %vm18_vm0, %v291_v27  ;;  %v253_v36 = vmul.f32 %v476_v32, %v639_v23 }
  0xb2   :  { %487 = vrsqrt.f32 %v207_v8  ;;  %430 = vmatpush3.bf16.xpose.msra.mxu0 %v305_v33  ;;  %v118_v17 = vpop.xlane.xlu1 %117 }
  0xb3   :  { %v115_v37 = vpop.xlane.xlu0 %114  ;;  %v478_v42 = vpop.eup %477  ;;  %v194_v43 = vmax.f32 %v118_v17, 1e-24  ;;  %v284_v51 = vpack.c.bf16 %v254_v16, %v253_v36 }
  0xb4   :  { %v193_v44 = vmax.f32 %v115_v37, 1e-24  ;;  %v480_v45 = vpop.eup %479  ;;  %v270_v49 = vmul.f32 %v478_v42, %v650_v28 }
  0xb5   :  { %489 = vrsqrt.f32 %v194_v43  ;;  %v269_v50 = vmul.f32 %v480_v45, %v655_v29  ;;  %v308_v61 = vsel %vm18_vm0, %v284_v51, 0 }
  0xb6   :  { %491 = vrsqrt.f32 %v193_v44  ;;  %v166_v54 = vpop.xlane.xlu1 %165 }
  0xb7   :  { %v163_v55 = vpop.xlane.xlu0 %162  ;;  %v482_v23 = vpop.eup %481  ;;  %v210_v56 = vmax.f32 %v166_v54, 1e-24  ;;  %v292_v57 = vpack.c.bf16 %v270_v49, %v269_v50 }
  0xb8   :  { %v209_v22 = vmax.f32 %v163_v55, 1e-24  ;;  %v484_v60 = vpop.eup %483  ;;  %v256_v28 = vmul.f32 %v482_v23, %v666_v34 }
  0xb9   :  { %493 = vrsqrt.f32 %v210_v56  ;;  %447 = vmatprep.subr.msk.bf16.mxu0 %vm18_vm0, %v292_v57  ;;  %v255_v62 = vmul.f32 %v484_v60, %v671_v35 }
  0xba   :  { %495 = vrsqrt.f32 %v209_v22  ;;  %432 = vmatpush3.bf16.xpose.msra.mxu0 %v308_v61  ;;  %v124_v29 = vpop.xlane.xlu1 %123 }
  0xbb   :  { %v121_v63 = vpop.xlane.xlu0 %120  ;;  %v486_v0 = vpop.eup %485  ;;  %v196_v2 = vmax.f32 %v124_v29, 1e-24  ;;  %v285_v10 = vpack.c.bf16 %v256_v28, %v255_v62 }
  0xbc   :  { %v195_v1 = vmax.f32 %v121_v63, 1e-24  ;;  %v488_v6 = vpop.eup %487  ;;  %v272_v5 = vmul.f32 %v486_v0, %v682_v40 }
  0xbd   :  { %497 = vrsqrt.f32 %v196_v2  ;;  %v271_v7 = vmul.f32 %v488_v6, %v687_v41  ;;  %v311_v24 = vsel %vm18_vm0, %v285_v10, 0 }
  0xbe   :  { %499 = vrsqrt.f32 %v195_v1  ;;  %v172_v11 = vpop.xlane.xlu1 %171 }
  0xbf   :  { %v169_v14 = vpop.xlane.xlu0 %168  ;;  %v490_v35 = vpop.eup %489  ;;  %v212_v15 = vmax.f32 %v172_v11, 1e-24  ;;  %v293_v18 = vpack.c.bf16 %v272_v5, %v271_v7 }
  0xc0   :  { %v211_v34 = vmax.f32 %v169_v14, 1e-24  ;;  %v492_v19 = vpop.eup %491  ;;  %v258_v40 = vmul.f32 %v490_v35, %v698_v46 }
  0xc1   :  { %501 = vrsqrt.f32 %v212_v15  ;;  %448 = vmatprep.subr.msk.bf16.mxu0 %vm18_vm0, %v293_v18  ;;  %v257_v25 = vmul.f32 %v492_v19, %v703_v47 }
  0xc2   :  { %503 = vrsqrt.f32 %v211_v34  ;;  %434 = vmatpush3.bf16.xpose.msra.mxu0 %v311_v24  ;;  %v130_v41 = vpop.xlane.xlu1 %129 }
  0xc3   :  { %v127_v9 = vpop.xlane.xlu0 %126  ;;  %v494_v26 = vpop.eup %493  ;;  %v198_v8 = vmax.f32 %v130_v41, 1e-24  ;;  %v286_v16 = vpack.c.bf16 %v258_v40, %v257_v25 }
  0xc4   :  { %v197_v27 = vmax.f32 %v127_v9, 1e-24  ;;  %v496_v32 = vpop.eup %495  ;;  %v274_v33 = vmul.f32 %v494_v26, %v714_v52 }
  0xc5   :  { %505 = vrsqrt.f32 %v198_v8  ;;  %v273_v36 = vmul.f32 %v496_v32, %v719_v53  ;;  %v314_v45 = vsel %vm18_vm0, %v286_v16, 0 }
  0xc6   :  { %507 = vrsqrt.f32 %v197_v27  ;;  %v178_v17 = vpop.xlane.xlu1 %177 }
  0xc7   :  { %v175_v37 = vpop.xlane.xlu0 %174  ;;  %v498_v47 = vpop.eup %497  ;;  %v214_v42 = vmax.f32 %v178_v17, 1e-24  ;;  %v294_v43 = vpack.c.bf16 %v274_v33, %v273_v36 }
  0xc8   :  { %v213_v46 = vmax.f32 %v175_v37, 1e-24  ;;  %v500_v44 = vpop.eup %499  ;;  %v260_v52 = vmul.f32 %v498_v47, %v730_v58 }
  0xc9   :  { %509 = vrsqrt.f32 %v214_v42  ;;  %449 = vmatprep.subr.msk.bf16.mxu0 %vm18_vm0, %v294_v43  ;;  %v259_v49 = vmul.f32 %v500_v44, %v735_v59 }
  0xca   :  { %511 = vrsqrt.f32 %v213_v46  ;;  %436 = vmatpush3.bf16.xpose.msra.mxu0 %v314_v45  ;;  %v136_v53 = vpop.xlane.xlu1 %135 }
  0xcb   :  { %v133_v50 = vpop.xlane.xlu0 %132  ;;  %v502_v51 = vpop.eup %501  ;;  %v200_v54 = vmax.f32 %v136_v53, 1e-24  ;;  %v287_v57 = vpack.c.bf16 %v260_v52, %v259_v49 }
  0xcc   :  { %v199_v55 = vmax.f32 %v133_v50, 1e-24  ;;  %v504_v23 = vpop.eup %503  ;;  %v276_v56 = vmul.f32 %v502_v51, %v746_v3 }
  0xcd   :  { %513 = vrsqrt.f32 %v200_v54  ;;  %v275_v22 = vmul.f32 %v504_v23, %v751_v4  ;;  %v317_v63 = vsel %vm18_vm0, %v287_v57, 0 }
  0xce   :  { %515 = vrsqrt.f32 %v199_v55  ;;  %v184_v60 = vpop.xlane.xlu1 %183 }
  0xcf   :  { %v181_v61 = vpop.xlane.xlu0 %180  ;;  %v506_v59 = vpop.eup %505  ;;  %v216_v62 = vmax.f32 %v184_v60, 1e-24  ;;  %v295_v28 = vpack.c.bf16 %v276_v56, %v275_v22 }
  0xd0   :  { %v215_v58 = vmax.f32 %v181_v61, 1e-24  ;;  %v508_v29 = vpop.eup %507  ;;  %v262_v3 = vmul.f32 %v506_v59, %v762_v12 }
  0xd1   :  { %517 = vrsqrt.f32 %v216_v62  ;;  %450 = vmatprep.subr.msk.bf16.mxu0 %vm18_vm0, %v295_v28  ;;  %v261_v0 = vmul.f32 %v508_v29, %v767_v13 }
  0xd2   :  { %519 = vrsqrt.f32 %v215_v58  ;;  %438 = vmatpush3.bf16.xpose.msra.mxu0 %v317_v63  ;;  %v401_v26 = vpop.permute.xlu1 %400 }
  0xd3   :  { %v21_v4 = vpop.xlane.xlu0 %20  ;;  %v510_v2 = vpop.eup %509  ;;  %v288_v10 = vpack.c.bf16 %v262_v3, %v261_v0 }
  0xd4   :  { %v22_v1 = vmax.f32 %v21_v4, 1e-24  ;;  %v512_v6 = vpop.eup %511  ;;  %v278_v5 = vmul.f32 %v510_v2, %v778_v20 }
  0xd5   :  { %v277_v7 = vmul.f32 %v512_v6, %v783_v21  ;;  %v320_v13 = vsel %vm18_vm0, %v288_v10, 0 }
  0xd6   :  { %521 = vrsqrt.f32 %v22_v1 }
  0xd7   :  { %v514_v11 = vpop.eup %513  ;;  %v296_v14 = vpack.c.bf16 %v278_v5, %v277_v7 }
  0xd8   :  { %v516_v35 = vpop.eup %515  ;;  %v264_v15 = vmul.f32 %v514_v11, %v794_v30  ;;  %v394_v30 = vlaneseq }
  0xd9   :  { %451 = vmatprep.subr.msk.bf16.mxu0 %vm18_vm0, %v296_v14  ;;  %v263_v12 = vmul.f32 %v516_v35, %v799_v31 }
  0xda   :  { %440 = vmatpush3.bf16.xpose.msra.mxu0 %v320_v13  ;;  %v395_v9 = vand.u32 127, %v394_v30 }
  0xdb   :  { %v518_v34 = vpop.eup %517  ;;  %v289_v21 = vpack.c.bf16 %v264_v15, %v263_v12 }
  0xdc   :  { %v520_v18 = vpop.eup %519  ;;  %v280_v20 = vmul.f32 %v518_v34, %v810_v38  ;;  %v396_v38 = vadd.s32 128, %v395_v9  ;;  %vm402_vm1 = vcmp.eq.s32.totalorder %v395_v9, %v401_v26 }
  0xdd   :  { %v279_v19 = vmul.f32 %v520_v18, %v815_v39  ;;  %v323_v41 = vsel %vm18_vm0, %v289_v21, 0 }
  0xde   :  { %vm403_vm2 = vcmp.eq.s32.totalorder %v396_v38, %v401_v26 }
  0xdf   :  { %v297_v25 = vpack.c.bf16 %v280_v20, %v279_v19 }
  0xe0   :  { %v522_v24 = vpop.eup %521 }
  0xe1   :  { %v24_v40 = vmul.f32 %v522_v24, %v826_v48  ;;  %452 = vmatprep.subr.msk.bf16.mxu0 %vm18_vm0, %v297_v25 }
  0xe2   :  { %442 = vmatpush3.bf16.xpose.msra.mxu0 %v323_v41 }
  0xe3   :  { %v281_v31 = vpack.c.bf16 %v24_v40, %v24_v40 }
  0xe5   :  { %443 = vmatprep.mubr.msk.bf16.mxu0 %vm18_vm0, %v281_v31 }
  0xe9   :  { %444 = vmatmul.mubr.msk.bf16.vlgmr.msra.gmra.mrb[0].mxu0 %vm18_vm0, %v281_v31 }
 0x1bc   :  { %v383_v39 = vpop.f32.mrb[0].mxu0 }
 0x1bd   :  { %v397_v8 = vmul.f32 30.0, %v383_v39  ;;  %v385_v27 = vpop.f32.mrb[1].mxu0 }
 0x1be   :  { %v398_v32 = vmul.f32 30.0, %v385_v27  ;;  %v387_v33 = vpop.f32.mrb[2].mxu0 }
 0x1bf   :  { %v425_v48 = vadd.f32 -9.0, %v397_v8  ;;  %v388_v36 = vpop.f32.mrb[3].mxu0 }
 0x1c0   :  { %v426_v16 = vadd.f32 -9.0, %v398_v32 }
 0x1c1   :  { %v406_v17 = vsel %vm402_vm1, %v425_v48, %v397_v8 }
 0x1c2   :  { %v407_v37 = vsel %vm403_vm2, %v426_v16, %v398_v32  ;;  %408 = vst [vmem:[#allocation2] sm:$0xff] %v406_v17 }
 0x1c3   :  { %409 = vst [vmem:[#allocation2 + $0x8] sm:$0xff] %v407_v37 }
 0x1c4   :  { %534 = shalt.err (!%p531_p4)
}
 0x1c5   :  { %s535_s28 = scalar_lea.hbm %s902_s3, 256 }
 0x1c6   :  { %p536_p5 = scmp.ne.s32.totalorder %s902_s3, %s535_s28  ;;  %p539_p6 = scmp.lt.u32.totalorder %s535_s28, %s902_s3 }
 0x1c8   :  { %p541_p7 = pnand %p539_p6, %p536_p5 }
 0x1ca   :  { %544 = shalt.err (!%p541_p7)
}
 0x1cb   :  { %419 = dma.vmem_to_hbm [thread:$0]  %s417_s2, 256, %s902_s3, [#allocation3]  }
 0x1cc   :  { %545 = dma.done.wait [#allocation3], 256  }
 0x1cd   :  { %546 = vsyncadd [#allocation3], 4294967040 }
 0x1ce   :  { %423 = vsyncpa [#allocation3], 1 }

</bundles_post_ra>
